<compile_context>
chip_gen: v7x
topology: tpu7x:2x2x1
jax: 0.10.0
libtpu: 0.0.40
codegen_flags: <defaults>
</compile_context>

<pallas_src>
import functools

import jax
import jax.numpy as jnp
from jax.experimental import pallas as pl
from jax.experimental.pallas import tpu as pltpu

# channel schedule of the ten pointwise convs
CHANNELS = [64, 64, 32, 32, 16, 16, 8, 8, 4, 4, 4]
NUM_LAYERS = len(CHANNELS) - 1  # 10
C_IN = CHANNELS[0]              # 64
C_OUT = CHANNELS[-1]            # 4

DEFAULT_TILE_L = 8192           # voxels (lanes) per grid step; sweep 4096..32768


def _encoder_kernel(x_ref, w_ref, b_ref, o_ref):
    """One (batch, voxel-tile) step of the folded pointwise-conv chain.

    x_ref: (1, 64, TILE_L)  activations (channels on sublanes, voxels on lanes)
    w_ref: (4, 64)          folded weight W_eff = W10 .. W1 (PyTorch (Cout,Cin))
    b_ref: (4, 1)           folded bias (f32), broadcasts over lanes
    o_ref: (1, 4, TILE_L)   lane-dense output tile
    """
    h = x_ref[0]                                   # (64, TILE_L)
    w = w_ref[...].astype(h.dtype)                 # no-op for f32 inputs
    # Single (4, 64) @ (64, TILE_L) on the MXU; f32 accumulation + f32 bias.
    y = jnp.dot(w, h, preferred_element_type=jnp.float32) + b_ref[...]
    o_ref[0] = y.astype(o_ref.dtype)


@functools.partial(jax.jit, static_argnames=("tile_l",))
def encoder_forward(x, w_eff, b_eff, *, tile_l=DEFAULT_TILE_L):
    """x: (N, 64, D, H, W).  w_eff: (4, 64).  b_eff: (4, 1).

    Returns (N, 4, D, H, W) in x.dtype.
    """
    n, c, d, hh, ww = x.shape
    assert c == C_IN, f"expected {C_IN} input channels, got {c}"
    v = d * hh * ww

    # Pure view: channels on sublanes, voxels on lanes.  No pad, no cast.
    x_in = x.reshape(n, c, v)

    if v <= tile_l:
        # Single tile spanning the full voxel axis (block dim == array dim is
        # always a legal block shape, even when v is not 128-aligned).
        tile = v
    else:
        # 128-aligned lane tile; Pallas clips/masks the boundary block.  The op
        # is strictly per-lane, so garbage lanes in a partial input block never
        # contaminate valid output lanes, and OOB output lanes are dropped.
        tile = max(128, (tile_l // 128) * 128)
    grid = (n, pl.cdiv(v, tile))

    in_specs = [
        pl.BlockSpec((1, C_IN, tile), lambda i, j: (i, 0, j)),
        pl.BlockSpec((C_OUT, C_IN), lambda i, j: (0, 0)),
        pl.BlockSpec((C_OUT, 1), lambda i, j: (0, 0)),
    ]
    out_spec = pl.BlockSpec((1, C_OUT, tile), lambda i, j: (i, 0, j))

    out_flat = pl.pallas_call(
        _encoder_kernel,
        out_shape=jax.ShapeDtypeStruct((n, C_OUT, v), x.dtype),
        grid_spec=pltpu.PrefetchScalarGridSpec(
            num_scalar_prefetch=0,
            grid=grid,
            in_specs=in_specs,
            out_specs=out_spec,
        ),
        compiler_params=pltpu.CompilerParams(
            dimension_semantics=("parallel", "parallel")),
    )(x_in, w_eff, b_eff.astype(jnp.float32))

    # (N, 4, V) -> (N, 4, D, H, W); reshape is free, no slicing needed.
    return out_flat.reshape(n, C_OUT, d, hh, ww)


def make_params(key):
    """Deterministic init in PyTorch layout: weight (Cout, Cin) (= squeezed
    (Cout, Cin, 1, 1, 1) conv weight), bias (Cout,)."""
    weights, biases = [], []
    for li in range(NUM_LAYERS):
        cin, cout = CHANNELS[li], CHANNELS[li + 1]
        key, kw, kb = jax.random.split(key, 3)
        bound = 1.0 / (cin ** 0.5)  # PyTorch default conv init range (k=1)
        w = jax.random.uniform(kw, (cout, cin), jnp.float32, -bound, bound)
        b = jax.random.uniform(kb, (cout,), jnp.float32, -bound, bound)
        weights.append(w)
        biases.append(b)
    return weights, biases


def fold_params(weights, biases):
    """Fold the 10 affine layers h -> W h + b into one: W_eff (4,64), b_eff (4,1).

    Exact in real arithmetic because the module has no nonlinearities."""
    w_eff = jnp.eye(C_IN, dtype=jnp.float32)
    b_eff = jnp.zeros((C_IN,), jnp.float32)
    for w, b in zip(weights, biases):
        b_eff = w @ b_eff + b
        w_eff = w @ w_eff
    return w_eff, b_eff.reshape(C_OUT, 1)


def reference_forward(x, weights, biases):
    """Plain-JAX reference of the unfolded pointwise-conv chain (for sanity)."""
    n, c, d, hh, ww = x.shape
    h = x.reshape(n, c, -1).astype(jnp.float32)          # (N, C, V)
    for w, b in zip(weights, biases):
        h = jnp.einsum("oc,ncv->nov", w, h) + b[None, :, None]
    return h.reshape(n, C_OUT, d, hh, ww).astype(x.dtype)


if __name__ == "__main__":
    key = jax.random.PRNGKey(0)
    key, kx1, kx2, kx3 = jax.random.split(key, 4)

    weights, biases = make_params(key)
    w_eff, b_eff = fold_params(weights, biases)

    # Test 1: small shape consistent with the module: batch=2, C=64, D=H=W=4
    # (v=64 < 128 -> single full-dim lane tile).
    x1 = jax.random.normal(kx1, (2, 64, 4, 4, 4), jnp.float32)
    out1 = jax.block_until_ready(encoder_forward(x1, w_eff, b_eff))
    ref1 = reference_forward(x1, weights, biases)
    assert out1.shape == (2, 4, 4, 4, 4), out1.shape
    assert jnp.allclose(out1, ref1, atol=1e-4, rtol=1e-4), "mismatch vs reference (f32)"

    # Test 2: non-128-multiple voxel count, still a single full-dim tile.
    x2 = jax.random.normal(kx2, (1, 64, 3, 5, 7), jnp.float32)
    out2 = jax.block_until_ready(encoder_forward(x2, w_eff, b_eff))
    ref2 = reference_forward(x2, weights, biases)
    assert out2.shape == (1, 4, 3, 5, 7), out2.shape
    assert jnp.allclose(out2, ref2, atol=1e-4, rtol=1e-4), "mismatch vs reference (odd V)"

    # Test 3: multi-tile grid with a partial boundary block (v=360, tile=128
    # -> 3 voxel tiles, last one only 104 valid lanes).  Exercises pad-free
    # boundary masking.
    x3 = jax.random.normal(kx3, (1, 64, 5, 8, 9), jnp.float32)
    out3 = jax.block_until_ready(encoder_forward(x3, w_eff, b_eff, tile_l=128))
    ref3 = reference_forward(x3, weights, biases)
    assert out3.shape == (1, 4, 5, 8, 9), out3.shape
    assert jnp.allclose(out3, ref3, atol=1e-4, rtol=1e-4), "mismatch vs reference (boundary)"

    print("KERNEL_OK")
</pallas_src>

<mosaic_0001>
module attributes {stable_mosaic.version = 11 : i64} {
  func.func @_encoder_kernel(%arg0: i32, %arg1: i32, %arg2: memref<1x64x64xf32, #tpu.memory_space<vmem>>, %arg3: memref<4x64xf32, #tpu.memory_space<vmem>>, %arg4: memref<4x1xf32, #tpu.memory_space<vmem>>, %arg5: memref<1x4x64xf32, #tpu.memory_space<vmem>>) attributes {dimension_semantics = [#tpu.dimension_semantics<parallel>, #tpu.dimension_semantics<parallel>], iteration_bounds = array<i64: 2, 1>, scalar_prefetch = 0 : i64, scratch_operands = 0 : i64, tpu.core_type = #tpu.core_type<tc>, window_params = [{transform_indices = @transform_0, window_bounds = array<i64: 1, 64, 64>}, {pipeline_mode = #tpu.pipeline_mode<synchronous>, transform_indices = @transform_1, window_bounds = array<i64: 4, 64>}, {pipeline_mode = #tpu.pipeline_mode<synchronous>, transform_indices = @transform_2, window_bounds = array<i64: 4, 1>}, {transform_indices = @transform_3, window_bounds = array<i64: 1, 4, 64>}]} {
    %c0 = arith.constant 0 : index
    %c0_0 = arith.constant 0 : index
    %c0_1 = arith.constant 0 : index
    %0 = vector.load %arg2[%c0, %c0_0, %c0_1] : memref<1x64x64xf32, #tpu.memory_space<vmem>>, vector<1x64x64xf32>
    %1 = vector.shape_cast %0 : vector<1x64x64xf32> to vector<64x64xf32>
    %c0_2 = arith.constant 0 : index
    %c0_3 = arith.constant 0 : index
    %2 = vector.load %arg3[%c0_2, %c0_3] : memref<4x64xf32, #tpu.memory_space<vmem>>, vector<4x64xf32>
    %cst = arith.constant dense<0.000000e+00> : vector<4x64xf32>
    %3 = tpu.matmul %2, %1, %cst {dimension_numbers = #tpu.dot_dimension_numbers<[1], [0], [0], [1], [0, 0, 1, 1], [], []>} : vector<4x64xf32>, vector<64x64xf32>, vector<4x64xf32> -> vector<4x64xf32>
    %c0_4 = arith.constant 0 : index
    %c0_5 = arith.constant 0 : index
    %4 = vector.load %arg4[%c0_4, %c0_5] : memref<4x1xf32, #tpu.memory_space<vmem>>, vector<4x1xf32>
    %5 = vector.broadcast %4 : vector<4x1xf32> to vector<4x64xf32>
    %6 = arith.addf %3, %5 : vector<4x64xf32>
    %c0_6 = arith.constant 0 : index
    %c0_7 = arith.constant 0 : index
    %c0_8 = arith.constant 0 : index
    %7 = vector.load %arg5[%c0_6, %c0_7, %c0_8] : memref<1x4x64xf32, #tpu.memory_space<vmem>>, vector<1x4x64xf32>
    %8 = vector.shape_cast %7 : vector<1x4x64xf32> to vector<4x64xf32>
    %9 = vector.shape_cast %6 : vector<4x64xf32> to vector<1x4x64xf32>
    tpu.vector_store %arg5[%c0_6, %c0_7, %c0_8], %9 {strides = array<i32>} : memref<1x4x64xf32, #tpu.memory_space<vmem>>, vector<1x4x64xf32>,
    return
  }
  func.func @transform_0(%arg0: i32, %arg1: i32) -> (i32, i32, i32) {
    %c0_i32 = arith.constant 0 : i32
    %c0_i32_0 = arith.constant 0 : i32
    return %arg0, %c0_i32, %arg1 : i32, i32, i32
  }
  func.func @transform_1(%arg0: i32, %arg1: i32) -> (i32, i32) {
    %c0_i32 = arith.constant 0 : i32
    %c0_i32_0 = arith.constant 0 : i32
    %c0_i32_1 = arith.constant 0 : i32
    return %c0_i32, %c0_i32_0 : i32, i32
  }
  func.func @transform_2(%arg0: i32, %arg1: i32) -> (i32, i32) {
    %c0_i32 = arith.constant 0 : i32
    %c0_i32_0 = arith.constant 0 : i32
    %c0_i32_1 = arith.constant 0 : i32
    return %c0_i32, %c0_i32_0 : i32, i32
  }
  func.func @transform_3(%arg0: i32, %arg1: i32) -> (i32, i32, i32) {
    %c0_i32 = arith.constant 0 : i32
    %c0_i32_0 = arith.constant 0 : i32
    return %arg0, %c0_i32, %arg1 : i32, i32, i32
  }
}

</mosaic_0001>

<bundles_post_ra>
// kernel: encoder_forward.1
= control target key start
LH: loop header
LB: loop body
LE: loop exit
PB: predicated region body
PF: predicated region fallthrough
CT: control target
= control target key end

     0   :  { %s497_s12 = smov 0   ;;  %s499_s13 = smov 0   ;;  %s540_s0 = inlined_call_operand.vmem [shape: f32[2,64,64], index: 0, kind: input, shape index: {}]   ;;  %s541_s1 = inlined_call_operand.vmem [shape: f32[4,64], index: 1, kind: input, shape index: {}]   ;;  %s542_s2 = inlined_call_operand.vmem [shape: f32[4,1], index: 2, kind: input, shape index: {}]   ;;  %s543_s3 = inlined_call_operand.vmem [shape: f32[2,4,64], index: 3, kind: output, shape index: {}]  }
   0x1   :  { %s501_s14 = smov 0  }
   0x2 LB: > { %s25_s15 = sadd.s32 1, %s467_s13  ;;  %p372_p0 = scmp.ge.s32.totalorder %s471_s14, 1  ;;  %s471_s14 = sphi %s501_s14, %s13_s14   ;;  %s467_s13 = sphi %s499_s13, %s545_s13   ;;  %s463_s12 = sphi %s497_s12, %s544_s12  }
   0x3   : > { %p27_p1 = scmp.ge.s32.totalorder %s25_s15, 2  ;;  %p156_p2 = scmp.lt.s32.totalorder %s471_s14, 3 }
   0x5   : > { %s547_s15 = smov (%p27_p1, %s25_s15), 0  ;;  %p157_p3 = pnand %p372_p0, %p156_p2 }
   0x6   : > { %p185_p4 = scmp.lt.s32.totalorder (!%p157_p3), %s463_s12, 1  ;;  %v473_v0 = vmov (!%p157_p3), 0.0|0.0   ;;  %vm474_vm0 = vmmov (!%p157_p3), 0   ;;  %v475_v1 = vmov (!%p157_p3), 0.0   ;;  %v209_v2 = vld [vmem:[%s542_s2] sm:$0xf] (!%p157_p3) }
   0x7   : > { %160 = sbr.rel (%p157_p3) target bundleno = 250 (0xfa), region = 32  ;;  %408 = vmatprep.subr.bf16.mxu0 (!%p157_p3), %v473_v0  ;;  %405 = vmatprep.mubr.msk.f32.mxu0 (!%p157_p3), %vm474_vm0, %v475_v1  ;;  %v476_v3 = vmov (!%p157_p3), 0   ;;  %v208_v16 = vld [vmem:[%s541_s1] sm:$0xf] (!%p157_p3)  ;;  %vm215_vm1 = vcmask (!%p157_p3), 523264   ;;  %vm289_vm2 = vcmask (!%p157_p3), 519168  }
   0x8   : > { %448 = vset.pattern.permute.xlu0 (!%p157_p3), %v476_v3 }
   0x9   : > { %212 = vperm.xlu0 (!%p157_p3), %448, %v209_v2  }
   0xe   : > { %s549_s12 = smov (!%p185_p4, %s463_s12), 1 }
   0xf   : > { %s379_s18 = sshll.u32 %s549_s12, 6  ;;  %s375_s24 = sshll.u32 %s549_s12, 2 }
  0x10   : > { %s192_s21 = scalar_lea.vmem %s540_s0, %s379_s18  ;;  %s199_s27 = scalar_lea.vmem %s543_s3, %s375_s24 }
  0x11   : > { %v200_v4 = vld [vmem:[%s192_s21] sm:$0xff]  ;;  %v201_v5 = vld [vmem:[%s192_s21 + $0x8] sm:$0xff]  ;;  %v202_v6 = vld [vmem:[%s192_s21 + $0x10] sm:$0xff] }
  0x12   : > { %v409_v7 = vpack.c.bf16 %v201_v5, %v200_v4  ;;  %v203_v8 = vld [vmem:[%s192_s21 + $0x18] sm:$0xff]  ;;  %v204_v10 = vld [vmem:[%s192_s21 + $0x20] sm:$0xff]  ;;  %v205_v11 = vld [vmem:[%s192_s21 + $0x28] sm:$0xff] }
  0x13   : > { %v412_v9 = vpack.c.bf16 %v203_v8, %v202_v6  ;;  %v415_v12 = vpack.c.bf16 %v205_v11, %v204_v10  ;;  %v206_v13 = vld [vmem:[%s192_s21 + $0x30] sm:$0xff]  ;;  %v207_v14 = vld [vmem:[%s192_s21 + $0x38] sm:$0xff] }
  0x14   : > { %410 = vmatpush3.bf16.msra.mxu0 %v409_v7  ;;  %v418_v15 = vpack.c.bf16 %v207_v14, %v206_v13 }
  0x15   : > { %411 = vmatprep.subr.bf16.mxu0 %v473_v0 }
  0x18   : > { %413 = vmatpush3.bf16.msra.mxu0 %v412_v9 }
  0x19   : > { %414 = vmatprep.subr.bf16.mxu0 %v473_v0 }
  0x1c   : > { %416 = vmatpush3.bf16.msra.mxu0 %v415_v12 }
  0x1d   : > { %417 = vmatprep.subr.bf16.mxu0 %v473_v0 }
  0x20   : > { %419 = vmatpush3.bf16.msra.mxu0 %v418_v15 }
  0x23   : > { %406 = vmatmul.mubr.msk.f32.vlgmr.msra.gmra.mrb[0].mxu0 %vm215_vm1, %v208_v16 }
  0x88   : > { %v213_v17 = vpop.permute.xlu0 %212 }
  0xf6   : > { %v285_v18 = vpop.f32.mrb[0].mxu0 }
  0xf7   : > { %v286_v19 = vadd.f32 %v285_v18, %v213_v17  ;;  %v407_v20 = vpop.f32.mrb[1].mxu0 }
  0xf9   : > { %290 = vst.msk [vmem:[%s199_s27] sm:$0xf] %vm289_vm2, %v286_v19 }
  0xfa PF: > { %s13_s14 = sadd.s32 1, %s471_s14   ;;  %s544_s12 = smov %s467_s13 }
  0xfb   : > { %p10_p5 = scmp.ge.s32.totalorder %s13_s14, 4   ;;  %s545_s13 = smov %s547_s15 }
  0xfd   :  { %12 = sbr.rel (!%p10_p5) target bundleno = 2 (0x2), region = 62 }

</bundles_post_ra>
